<compile_context>
chip_gen: v7x
topology: tpu7x:2x2x1
jax: 0.10.0
libtpu: 0.0.40
codegen_flags: <defaults>
</compile_context>

<pallas_src>
import jax
import jax.numpy as jnp
from jax.experimental import pallas as pl
from jax.experimental.pallas import tpu as pltpu

SELU_ALPHA = 1.6732632423543772848170429916717
SELU_SCALE = 1.0507009873554804934193349852946


def _selu(x):
    return SELU_SCALE * jnp.where(x > 0, x, SELU_ALPHA * (jnp.exp(x) - 1.0))


def custom_nn_kernel(x_ref, wa_ref, ba_ref, w23_ref, b23_ref,
                     wfb_ref, bfb_ref, out_ref):
    # Weights may be bf16 (single-pass MXU operands); accumulation and all
    # elementwise math (SELU, bias adds, softmax) stay f32.
    wa = wa_ref[...]
    w23 = w23_ref[...]
    wfb = wfb_ref[...]
    mxu_dt = wa.dtype

    # In-kernel MXU-operand cast (x itself stays f32 in HBM -> no extra HBM
    # traffic from a wrapper-side cast).
    x = x_ref[...].astype(mxu_dt)

    # Fused block_1 / block_2 layer 1 (block-diagonal Wa): Linear -> SELU.
    h = jnp.dot(x, wa, preferred_element_type=jnp.float32) + ba_ref[...]
    h = _selu(h)

    # Pre-fused (block layer-2 ∘ final_block layer-1): Linear -> SELU.
    hf = (jnp.dot(h.astype(mxu_dt), w23, preferred_element_type=jnp.float32)
          + b23_ref[...])
    hf = _selu(hf)

    # final_block layer 2: Linear (logits, no SELU).
    logits = (jnp.dot(hf.astype(mxu_dt), wfb, preferred_element_type=jnp.float32)
              + bfb_ref[...])

    # Softmax over dim=1 (output_dim > 1); the divide goes to the EUP slot.
    m = jnp.max(logits, axis=-1, keepdims=True)
    e = jnp.exp(logits - m)
    denom = jnp.sum(e, axis=-1, keepdims=True)
    out_ref[...] = (e * pl.reciprocal(denom, approx=True)).astype(out_ref.dtype)


def _vmem_limits():
    """Returns (vmem_limit_bytes, tile_sizing_budget_bytes), generation-aware."""
    phys = None
    try:
        info = pltpu.get_tpu_info()
        for attr in ("vmem_capacity_bytes", "vmem_size_bytes", "vmem_bytes"):
            phys = getattr(info, attr, None)
            if phys:
                break
    except Exception:
        phys = None
    if not phys:
        phys = 64 << 20                      # conservative fallback: v7x per-TC VMEM
    # v5e/v6e (128 MiB physical) -> 96 MiB limit; v7x (64 MiB) -> 48 MiB limit.
    limit = max(32 << 20, min((int(phys) * 3) // 4, 96 << 20))
    # Tile-sizing budget leaves headroom for weights, pipeline buffers and
    # compiler-internal scratch (v7x -> ~24 MiB, v5e/v6e -> ~48 MiB).
    budget = limit // 2
    return int(limit), int(budget)


def custom_nn_forward(x, fused_params, *, use_bf16_mxu=True, tile_batch=8192):
    """x: [B, 2*input_dim] float32. fused_params: dict from fuse_params()."""
    B, feat_in = x.shape
    wa, ba = fused_params["wa"], fused_params["ba"]
    w23, b23 = fused_params["w23"], fused_params["b23"]
    wfb, bfb = fused_params["wfb"], fused_params["bfb"]
    h2_dim = wa.shape[1]               # 2 * hidden_dim
    h_dim = w23.shape[1]               # hidden_dim
    output_dim = wfb.shape[1]

    # Only the tiny, VMEM-resident weights are cast for single-pass MXU
    # operands; biases stay f32 (added onto the f32 accumulator).
    mxu_dtype = jnp.bfloat16 if use_bf16_mxu else jnp.float32
    op_bytes = jnp.dtype(mxu_dtype).itemsize
    wa_c = wa.astype(mxu_dtype)
    w23_c = w23.astype(mxu_dtype)
    wfb_c = wfb.astype(mxu_dtype)

    # --- batch tile sizing against a generation-aware VMEM budget ----------
    vmem_limit, budget = _vmem_limits()
    per_row = (
        2 * feat_in * x.dtype.itemsize        # double-buffered x tile
        + feat_in * op_bytes                  # in-kernel MXU-operand cast of x
        + 2 * output_dim * 4                  # double-buffered out tile (f32)
        + h2_dim * (4 + op_bytes)             # h (f32) + MXU-operand cast
        + h_dim * (4 + op_bytes)              # hf (f32) + MXU-operand cast
        + 4 * output_dim * 4                  # logits / max / exp / normalized temps
    )
    max_rows = max(8, (budget // per_row) // 8 * 8)
    TB = min(tile_batch, max_rows)

    if TB >= B:
        # Whole batch fits in one tile. On v7x an idle second TensorCore is a
        # straight 2x loss, so keep the grid at >= 2 steps when B is large
        # enough (tiles must stay multiples of 8 for the (8, 128) layout rule).
        if B >= 16:
            TB = ((-(-B // 2) + 7) // 8) * 8
            if TB >= B:
                TB = B
        else:
            TB = B
    elif TB % 8:
        TB = max(8, TB - TB % 8)
    grid = (pl.cdiv(B, TB),)

    x_map = lambda i: (i, 0)
    w_map = lambda i: (0, 0)          # constant index -> weights stay VMEM-resident
    # TODO(synk): pipeline_mode=pl.Buffered(1) on the resident weight specs
    # would reclaim their (tiny) second pipeline buffer; skipped for safety.

    in_specs = [
        pl.BlockSpec((TB, feat_in), x_map),
        pl.BlockSpec(wa.shape, w_map), pl.BlockSpec(ba.shape, w_map),
        pl.BlockSpec(w23.shape, w_map), pl.BlockSpec(b23.shape, w_map),
        pl.BlockSpec(wfb.shape, w_map), pl.BlockSpec(bfb.shape, w_map),
    ]
    # Output stays output_dim wide: masked-vst cost at output_dim=4 is far
    # below the MXU-push / x-read cost; lane-padding would blow up HBM stores.
    out_specs = pl.BlockSpec((TB, output_dim), x_map)

    return pl.pallas_call(
        custom_nn_kernel,
        out_shape=jax.ShapeDtypeStruct((B, output_dim), jnp.float32),
        grid_spec=pltpu.PrefetchScalarGridSpec(
            num_scalar_prefetch=0, grid=grid,
            in_specs=in_specs, out_specs=out_specs),
        compiler_params=pltpu.CompilerParams(
            dimension_semantics=("parallel",),
            vmem_limit_bytes=vmem_limit),
    )(x, wa_c, ba, w23_c, b23, wfb_c, bfb)


def init_params(key, input_dim, hidden_dim, output_dim):
    """Deterministic synthetic init. Weights stored as [in, out] (x @ W + b)."""
    ks = jax.random.split(key, 12)

    def lin(kw, kb, fan_in, fan_out):
        w = jax.random.normal(kw, (fan_in, fan_out), jnp.float32) / jnp.sqrt(fan_in)
        b = 0.1 * jax.random.normal(kb, (1, fan_out), jnp.float32)
        return w, b

    w1a, b1a = lin(ks[0], ks[1], input_dim, hidden_dim)
    w1b, b1b = lin(ks[2], ks[3], hidden_dim, hidden_dim)
    w2a, b2a = lin(ks[4], ks[5], input_dim, hidden_dim)
    w2b, b2b = lin(ks[6], ks[7], hidden_dim, hidden_dim)
    wfa, bfa = lin(ks[8], ks[9], 2 * hidden_dim, hidden_dim)
    wfb, bfb = lin(ks[10], ks[11], hidden_dim, output_dim)
    return dict(w1a=w1a, b1a=b1a, w1b=w1b, b1b=b1b,
                w2a=w2a, b2a=b2a, w2b=w2b, b2b=b2b,
                wfa=wfa, bfa=bfa, wfb=wfb, bfb=bfb)


def fuse_params(p):
    """Host-side, one-time fusions:
       * block_1 / block_2 layer-1 -> block-diagonal Wa (shared matmul);
       * block layer-2 (no activation) folded into final_block layer-1:
           W23 = blockdiag(w1b, w2b) @ wfa,  b23 = cat(b1b, b2b) @ wfa + bfa.
       linear∘linear is linear, so this is exact up to f32 rounding."""
    def blockdiag(a, b):
        top = jnp.concatenate([a, jnp.zeros((a.shape[0], b.shape[1]), a.dtype)], axis=1)
        bot = jnp.concatenate([jnp.zeros((b.shape[0], a.shape[1]), b.dtype), b], axis=1)
        return jnp.concatenate([top, bot], axis=0)

    hp = jax.lax.Precision.HIGHEST     # keep the host-side fold near-exact f32
    wb = blockdiag(p["w1b"], p["w2b"])
    bb = jnp.concatenate([p["b1b"], p["b2b"]], axis=1)
    w23 = jnp.dot(wb, p["wfa"], precision=hp)
    b23 = jnp.dot(bb, p["wfa"], precision=hp) + p["bfa"]
    return dict(
        wa=blockdiag(p["w1a"], p["w2a"]),
        ba=jnp.concatenate([p["b1a"], p["b2a"]], axis=1),
        w23=w23, b23=b23,
        wfb=p["wfb"], bfb=p["bfb"],
    )


def reference_forward(x, params, input_dim):
    """Pure-JAX reference mirroring the PyTorch forward (dropout=None)."""
    x1 = x[:, :input_dim]
    x2 = x[:, input_dim:]
    h1 = _selu(x1 @ params["w1a"] + params["b1a"]) @ params["w1b"] + params["b1b"]
    h2 = _selu(x2 @ params["w2a"] + params["b2a"]) @ params["w2b"] + params["b2b"]
    h = jnp.concatenate([h1, h2], axis=1)
    h = _selu(h @ params["wfa"] + params["bfa"]) @ params["wfb"] + params["bfb"]
    return jax.nn.softmax(h, axis=1)


if __name__ == "__main__":
    INPUT_DIM, HIDDEN_DIM, OUTPUT_DIM = 16, 32, 4
    BATCH = 16

    key = jax.random.PRNGKey(0)
    kx, kp = jax.random.split(key)
    x = jax.random.normal(kx, (BATCH, 2 * INPUT_DIM), jnp.float32)
    raw_params = init_params(kp, INPUT_DIM, HIDDEN_DIM, OUTPUT_DIM)
    fused_params = fuse_params(raw_params)

    ref = reference_forward(x, raw_params, INPUT_DIM)

    # f32 MXU-operand path, explicit small tile (2 grid steps: pipelining +
    # weight residency + multi-TC grid exercised).
    out_f32 = custom_nn_forward(x, fused_params, use_bf16_mxu=False,
                                tile_batch=8)
    out_f32 = jax.block_until_ready(out_f32)
    assert out_f32.shape == (BATCH, OUTPUT_DIM)
    assert jnp.allclose(out_f32, ref, atol=5e-3, rtol=5e-3), "f32 mismatch vs reference"

    # bf16 MXU-operand path, default (large) tile_batch; auto-splits into a
    # 2-step grid so both v7x TensorCores would get work.
    out_bf16 = custom_nn_forward(x, fused_params, use_bf16_mxu=True)
    out_bf16 = jax.block_until_ready(out_bf16)
    assert out_bf16.shape == (BATCH, OUTPUT_DIM)
    assert jnp.allclose(out_bf16, ref, atol=2.5e-2, rtol=2.5e-2), "bf16 mismatch vs reference"
    assert jnp.allclose(jnp.sum(out_bf16, axis=1), 1.0, atol=1e-2), "softmax rows != 1"

    # Ragged batch (B not a multiple of the tile): padded last-tile rows are
    # discarded by the masked output store.
    B2 = 100
    x2 = jax.random.normal(jax.random.PRNGKey(1), (B2, 2 * INPUT_DIM), jnp.float32)
    ref2 = reference_forward(x2, raw_params, INPUT_DIM)
    out2 = jax.block_until_ready(custom_nn_forward(x2, fused_params))
    assert out2.shape == (B2, OUTPUT_DIM)
    assert jnp.allclose(out2, ref2, atol=2.5e-2, rtol=2.5e-2), "ragged-batch mismatch"

    print("KERNEL_OK")
</pallas_src>

<mosaic_0001>
module attributes {stable_mosaic.version = 11 : i64} {
  func.func @custom_nn_kernel(%arg0: i32, %arg1: memref<8x32xf32, #tpu.memory_space<vmem>>, %arg2: memref<32x64xf32, #tpu.memory_space<vmem>>, %arg3: memref<1x64xf32, #tpu.memory_space<vmem>>, %arg4: memref<64x32xf32, #tpu.memory_space<vmem>>, %arg5: memref<1x32xf32, #tpu.memory_space<vmem>>, %arg6: memref<32x4xf32, #tpu.memory_space<vmem>>, %arg7: memref<1x4xf32, #tpu.memory_space<vmem>>, %arg8: memref<8x4xf32, #tpu.memory_space<vmem>>) attributes {dimension_semantics = [#tpu.dimension_semantics<parallel>], iteration_bounds = array<i64: 2>, scalar_prefetch = 0 : i64, scratch_operands = 0 : i64, tpu.core_type = #tpu.core_type<tc>, window_params = [{transform_indices = @transform_0, window_bounds = array<i64: 8, 32>}, {pipeline_mode = #tpu.pipeline_mode<synchronous>, transform_indices = @transform_1, window_bounds = array<i64: 32, 64>}, {pipeline_mode = #tpu.pipeline_mode<synchronous>, transform_indices = @transform_2, window_bounds = array<i64: 1, 64>}, {pipeline_mode = #tpu.pipeline_mode<synchronous>, transform_indices = @transform_3, window_bounds = array<i64: 64, 32>}, {pipeline_mode = #tpu.pipeline_mode<synchronous>, transform_indices = @transform_4, window_bounds = array<i64: 1, 32>}, {pipeline_mode = #tpu.pipeline_mode<synchronous>, transform_indices = @transform_5, window_bounds = array<i64: 32, 4>}, {pipeline_mode = #tpu.pipeline_mode<synchronous>, transform_indices = @transform_6, window_bounds = array<i64: 1, 4>}, {transform_indices = @transform_7, window_bounds = array<i64: 8, 4>}]} {
    %c0 = arith.constant 0 : index
    %c0_0 = arith.constant 0 : index
    %0 = vector.load %arg2[%c0, %c0_0] : memref<32x64xf32, #tpu.memory_space<vmem>>, vector<32x64xf32>
    %c0_1 = arith.constant 0 : index
    %c0_2 = arith.constant 0 : index
    %1 = vector.load %arg4[%c0_1, %c0_2] : memref<64x32xf32, #tpu.memory_space<vmem>>, vector<64x32xf32>
    %c0_3 = arith.constant 0 : index
    %c0_4 = arith.constant 0 : index
    %2 = vector.load %arg6[%c0_3, %c0_4] : memref<32x4xf32, #tpu.memory_space<vmem>>, vector<32x4xf32>
    %c0_5 = arith.constant 0 : index
    %c0_6 = arith.constant 0 : index
    %3 = vector.load %arg1[%c0_5, %c0_6] : memref<8x32xf32, #tpu.memory_space<vmem>>, vector<8x32xf32>
    %cst = arith.constant dense<0.000000e+00> : vector<8x64xf32>
    %4 = tpu.matmul %3, %0, %cst {dimension_numbers = #tpu.dot_dimension_numbers<[1], [0], [0], [1], [0, 0, 1, 1], [], []>} : vector<8x32xf32>, vector<32x64xf32>, vector<8x64xf32> -> vector<8x64xf32>
    %c0_7 = arith.constant 0 : index
    %c0_8 = arith.constant 0 : index
    %5 = vector.load %arg3[%c0_7, %c0_8] : memref<1x64xf32, #tpu.memory_space<vmem>>, vector<1x64xf32>
    %6 = vector.broadcast %5 : vector<1x64xf32> to vector<8x64xf32>
    %7 = arith.addf %4, %6 : vector<8x64xf32>
    %cst_9 = arith.constant 0.000000e+00 : f32
    %8 = vector.broadcast %cst_9 : f32 to vector<8x64xf32>
    %9 = arith.cmpf ogt, %7, %8 : vector<8x64xf32>
    %10 = math.exp %7 : vector<8x64xf32>
    %cst_10 = arith.constant 1.000000e+00 : f32
    %11 = vector.broadcast %cst_10 : f32 to vector<8x64xf32>
    %12 = arith.subf %10, %11 : vector<8x64xf32>
    %cst_11 = arith.constant 1.67326319 : f32
    %13 = vector.broadcast %cst_11 : f32 to vector<8x64xf32>
    %14 = arith.mulf %13, %12 : vector<8x64xf32>
    %15 = arith.select %9, %7, %14 : vector<8x64xi1>, vector<8x64xf32>
    %cst_12 = arith.constant 1.05070102 : f32
    %16 = vector.broadcast %cst_12 : f32 to vector<8x64xf32>
    %17 = arith.mulf %16, %15 : vector<8x64xf32>
    %cst_13 = arith.constant dense<0.000000e+00> : vector<8x32xf32>
    %18 = tpu.matmul %17, %1, %cst_13 {dimension_numbers = #tpu.dot_dimension_numbers<[1], [0], [0], [1], [0, 0, 1, 1], [], []>} : vector<8x64xf32>, vector<64x32xf32>, vector<8x32xf32> -> vector<8x32xf32>
    %c0_14 = arith.constant 0 : index
    %c0_15 = arith.constant 0 : index
    %19 = vector.load %arg5[%c0_14, %c0_15] : memref<1x32xf32, #tpu.memory_space<vmem>>, vector<1x32xf32>
    %20 = vector.broadcast %19 : vector<1x32xf32> to vector<8x32xf32>
    %21 = arith.addf %18, %20 : vector<8x32xf32>
    %cst_16 = arith.constant 0.000000e+00 : f32
    %22 = vector.broadcast %cst_16 : f32 to vector<8x32xf32>
    %23 = arith.cmpf ogt, %21, %22 : vector<8x32xf32>
    %24 = math.exp %21 : vector<8x32xf32>
    %cst_17 = arith.constant 1.000000e+00 : f32
    %25 = vector.broadcast %cst_17 : f32 to vector<8x32xf32>
    %26 = arith.subf %24, %25 : vector<8x32xf32>
    %cst_18 = arith.constant 1.67326319 : f32
    %27 = vector.broadcast %cst_18 : f32 to vector<8x32xf32>
    %28 = arith.mulf %27, %26 : vector<8x32xf32>
    %29 = arith.select %23, %21, %28 : vector<8x32xi1>, vector<8x32xf32>
    %cst_19 = arith.constant 1.05070102 : f32
    %30 = vector.broadcast %cst_19 : f32 to vector<8x32xf32>
    %31 = arith.mulf %30, %29 : vector<8x32xf32>
    %cst_20 = arith.constant dense<0.000000e+00> : vector<8x4xf32>
    %32 = tpu.matmul %31, %2, %cst_20 {dimension_numbers = #tpu.dot_dimension_numbers<[1], [0], [0], [1], [0, 0, 1, 1], [], []>} : vector<8x32xf32>, vector<32x4xf32>, vector<8x4xf32> -> vector<8x4xf32>
    %c0_21 = arith.constant 0 : index
    %c0_22 = arith.constant 0 : index
    %33 = vector.load %arg7[%c0_21, %c0_22] : memref<1x4xf32, #tpu.memory_space<vmem>>, vector<1x4xf32>
    %34 = vector.broadcast %33 : vector<1x4xf32> to vector<8x4xf32>
    %35 = arith.addf %32, %34 : vector<8x4xf32>
    %cst_23 = arith.constant dense<0xFF800000> : vector<8xf32>
    %36 = vector.multi_reduction <maximumf>, %35, %cst_23 [1] : vector<8x4xf32> to vector<8xf32>
    %37 = vector.shape_cast %36 : vector<8xf32> to vector<8x1xf32>
    %38 = vector.broadcast %37 : vector<8x1xf32> to vector<8x4xf32>
    %39 = arith.subf %35, %38 : vector<8x4xf32>
    %40 = math.exp %39 : vector<8x4xf32>
    %cst_24 = arith.constant dense<0.000000e+00> : vector<8xf32>
    %41 = vector.multi_reduction <add>, %40, %cst_24 [1] : vector<8x4xf32> to vector<8xf32>
    %42 = vector.shape_cast %41 : vector<8xf32> to vector<8x1xf32>
    %43 = tpu.reciprocal %42 {approx = true} : vector<8x1xf32> -> vector<8x1xf32>
    %44 = vector.broadcast %43 : vector<8x1xf32> to vector<8x4xf32>
    %45 = arith.mulf %40, %44 : vector<8x4xf32>
    %c0_25 = arith.constant 0 : index
    %c0_26 = arith.constant 0 : index
    %46 = vector.load %arg8[%c0_25, %c0_26] : memref<8x4xf32, #tpu.memory_space<vmem>>, vector<8x4xf32>
    tpu.vector_store %arg8[%c0_25, %c0_26], %45 {strides = array<i32>} : memref<8x4xf32, #tpu.memory_space<vmem>>, vector<8x4xf32>,
    return
  }
  func.func @transform_0(%arg0: i32) -> (i32, i32) {
    %c0_i32 = arith.constant 0 : i32
    %c0_i32_0 = arith.constant 0 : i32
    return %arg0, %c0_i32 : i32, i32
  }
  func.func @transform_1(%arg0: i32) -> (i32, i32) {
    %c0_i32 = arith.constant 0 : i32
    %c0_i32_0 = arith.constant 0 : i32
    %c0_i32_1 = arith.constant 0 : i32
    return %c0_i32, %c0_i32_0 : i32, i32
  }
  func.func @transform_2(%arg0: i32) -> (i32, i32) {
    %c0_i32 = arith.constant 0 : i32
    %c0_i32_0 = arith.constant 0 : i32
    %c0_i32_1 = arith.constant 0 : i32
    return %c0_i32, %c0_i32_0 : i32, i32
  }
  func.func @transform_3(%arg0: i32) -> (i32, i32) {
    %c0_i32 = arith.constant 0 : i32
    %c0_i32_0 = arith.constant 0 : i32
    %c0_i32_1 = arith.constant 0 : i32
    return %c0_i32, %c0_i32_0 : i32, i32
  }
  func.func @transform_4(%arg0: i32) -> (i32, i32) {
    %c0_i32 = arith.constant 0 : i32
    %c0_i32_0 = arith.constant 0 : i32
    %c0_i32_1 = arith.constant 0 : i32
    return %c0_i32, %c0_i32_0 : i32, i32
  }
  func.func @transform_5(%arg0: i32) -> (i32, i32) {
    %c0_i32 = arith.constant 0 : i32
    %c0_i32_0 = arith.constant 0 : i32
    %c0_i32_1 = arith.constant 0 : i32
    return %c0_i32, %c0_i32_0 : i32, i32
  }
  func.func @transform_6(%arg0: i32) -> (i32, i32) {
    %c0_i32 = arith.constant 0 : i32
    %c0_i32_0 = arith.constant 0 : i32
    %c0_i32_1 = arith.constant 0 : i32
    return %c0_i32, %c0_i32_0 : i32, i32
  }
  func.func @transform_7(%arg0: i32) -> (i32, i32) {
    %c0_i32 = arith.constant 0 : i32
    %c0_i32_0 = arith.constant 0 : i32
    return %arg0, %c0_i32 : i32, i32
  }
}

</mosaic_0001>

<bundles_post_ra>
// kernel: tpu_custom_call.1
= control target key start
LH: loop header
LB: loop body
LE: loop exit
PB: predicated region body
PF: predicated region fallthrough
CT: control target
= control target key end

     0   :  { %s784_s24 = smov 0   ;;  %s873_s0 = inlined_call_operand.vmem [shape: f32[16,32], index: 0, kind: input, shape index: {}]   ;;  %s874_s1 = inlined_call_operand.vmem [shape: f32[32,64], index: 1, kind: input, shape index: {}]   ;;  %s875_s2 = inlined_call_operand.vmem [shape: f32[1,64], index: 2, kind: input, shape index: {}]   ;;  %s876_s3 = inlined_call_operand.vmem [shape: f32[64,32], index: 3, kind: input, shape index: {}]   ;;  %s877_s4 = inlined_call_operand.vmem [shape: f32[1,32], index: 4, kind: input, shape index: {}]   ;;  %s878_s5 = inlined_call_operand.vmem [shape: f32[32,4], index: 5, kind: input, shape index: {}]   ;;  %s879_s6 = inlined_call_operand.vmem [shape: f32[1,4], index: 6, kind: input, shape index: {}]   ;;  %s880_s7 = inlined_call_operand.vmem [shape: f32[16,4], index: 7, kind: output, shape index: {}]  }
   0x1 LB: > { %s613_s25 = sadd.s32 4294967295, %s739_s24   ;;  %p617_p0 = scmp.ge.s32.totalorder %s739_s24, 1  ;;  %s739_s24 = sphi %s784_s24, %s17_s24  }
   0x2   : > { %p236_p1 = scmp.lt.s32.totalorder %s739_s24, 3 }
   0x4   : > { %p237_p2 = pnand %p617_p0, %p236_p1 }
   0x5   : > { %v274_v0 = vld [vmem:[%s874_s1] sm:$0xff] (!%p237_p2)  ;;  %v275_v1 = vld [vmem:[%s874_s1 + $0x8] sm:$0xff] (!%p237_p2)  ;;  %v276_v2 = vld [vmem:[%s874_s1 + $0x10] sm:$0xff] (!%p237_p2)  ;;  %v741_v3 = vmov (!%p237_p2), 0.0|0.0   ;;  %vm742_vm0 = vmmov (!%p237_p2), 0   ;;  %v743_v6 = vmov (!%p237_p2), 0.0  }
   0x6   : > { %240 = sbr.rel (%p237_p2) target bundleno = 1014 (0x3f6), region = 48  ;;  %690 = vmatprep.subr.bf16.mxu0 (!%p237_p2), %v741_v3  ;;  %v691_v4 = vpack.c.bf16 (!%p237_p2), %v275_v1, %v274_v0  ;;  %v277_v5 = vld [vmem:[%s874_s1 + $0x18] sm:$0xff] (!%p237_p2)  ;;  %657 = vmatprep.mubr.msk.f32.mxu0 (!%p237_p2), %vm742_vm0, %v743_v6  ;;  %p266_p3 = scmp.lt.s32.totalorder (!%p237_p2), %s613_s25, 1  ;;  %vm298_vm1 = vcmask (!%p237_p2), 261120   ;;  %v278_v9 = vld [vmem:[%s876_s3] sm:$0xff] (!%p237_p2)  ;;  %v279_v10 = vld [vmem:[%s876_s3 + $0x8] sm:$0xff] (!%p237_p2) }
   0x7   : > { %696 = vmatprep.subr.bf16.mxu1 (!%p237_p2), %v741_v3  ;;  %676 = vmatprep.mubr.msk.f32.mxu1 (!%p237_p2), %vm742_vm0, %v743_v6  ;;  %v694_v7 = vpack.c.bf16 (!%p237_p2), %v277_v5, %v276_v2  ;;  %v697_v11 = vpack.c.bf16 (!%p237_p2), %v279_v10, %v278_v9  ;;  %v280_v12 = vld [vmem:[%s876_s3 + $0x10] sm:$0xff] (!%p237_p2)  ;;  %v281_v13 = vld [vmem:[%s876_s3 + $0x18] sm:$0xff] (!%p237_p2)  ;;  %v282_v15 = vld [vmem:[%s876_s3 + $0x20] sm:$0xff] (!%p237_p2)  ;;  %vm386_vm3 = vcmask (!%p237_p2), 523264   ;;  %vm547_vm5 = vcmask (!%p237_p2), 31744  }
   0x8   : > { %692 = vmatpush3.bf16.msra.mxu0 (!%p237_p2), %v691_v4  ;;  %v700_v14 = vpack.c.bf16 (!%p237_p2), %v281_v13, %v280_v12  ;;  %v283_v16 = vld [vmem:[%s876_s3 + $0x28] sm:$0xff] (!%p237_p2)  ;;  %v284_v18 = vld [vmem:[%s876_s3 + $0x30] sm:$0xff] (!%p237_p2)  ;;  %v285_v19 = vld [vmem:[%s876_s3 + $0x38] sm:$0xff] (!%p237_p2) }
   0x9   : > { %693 = vmatprep.subr.bf16.mxu0 (!%p237_p2), %v741_v3  ;;  %698 = vmatpush3.bf16.msra.mxu1 (!%p237_p2), %v697_v11  ;;  %v703_v17 = vpack.c.bf16 (!%p237_p2), %v283_v16, %v282_v15  ;;  %v706_v20 = vpack.c.bf16 (!%p237_p2), %v285_v19, %v284_v18  ;;  %v620_v21 = vld [vmem:[%s875_s2] ss:$0 sm:$0xff] (!%p237_p2)  ;;  %v287_v32 = vld [vmem:[%s878_s5 + $0x8] sm:$0xff] (!%p237_p2)  ;;  %v288_v34 = vld [vmem:[%s878_s5 + $0x10] sm:$0xff] (!%p237_p2) }
   0xa   : > { %699 = vmatprep.subr.bf16.mxu1 (!%p237_p2), %v741_v3  ;;  %v286_v31 = vld [vmem:[%s878_s5] sm:$0xff] (!%p237_p2)  ;;  %v289_v35 = vld [vmem:[%s878_s5 + $0x18] sm:$0xff] (!%p237_p2) }
   0xb   : > { %v709_v33 = vpack.c.bf16 (!%p237_p2), %v287_v32, %v286_v31  ;;  %v712_v36 = vpack.c.bf16 (!%p237_p2), %v289_v35, %v288_v34  ;;  %v623_v37 = vld [vmem:[%s877_s4] ss:$0 sm:$0xff] (!%p237_p2) }
   0xc   : > { %695 = vmatpush3.bf16.msra.mxu0 (!%p237_p2), %v694_v7  ;;  %v626_v47 = vld [vmem:[%s879_s6] ss:$0 sm:$0xff] (!%p237_p2) }
   0xd   : > { %s882_s25 = smov (!%p266_p3, %s613_s25), 1  ;;  %708 = vmatprep.subr.bf16.mxu0 %v741_v3  ;;  %701 = vmatpush3.bf16.msra.mxu1 %v700_v14 }
   0xe   : > { %s618_s11 = sshll.u32 %s882_s25, 3  ;;  %702 = vmatprep.subr.bf16.mxu1 %v741_v3 }
   0xf   : > { %s269_s14 = scalar_lea.vmem %s873_s0, %s618_s11  ;;  %s273_s29 = scalar_lea.vmem %s880_s7, %s618_s11 }
  0x10   : > { %v290_v8 = vld [vmem:[%s269_s14] sm:$0xff] }
  0x11   : > { %658 = vmatmul.mubr.msk.f32.vlgmr.msra.gmra.mrb[0].mxu0 %vm298_vm1, %v290_v8  ;;  %704 = vmatpush3.bf16.msra.mxu1 %v703_v17 }
  0x12   : > { %687 = vmatprep.mubr.msk.f32.mxu0 %vm742_vm0, %v743_v6  ;;  %705 = vmatprep.subr.bf16.mxu1 %v741_v3 }
  0x13   : > { %710 = vmatpush3.bf16.msra.mxu0 %v709_v33 }
  0x14   : > { %711 = vmatprep.subr.bf16.mxu0 %v741_v3 }
  0x15   : > { %707 = vmatpush3.bf16.msra.mxu1 %v706_v20 }
  0x17   : > { %713 = vmatpush3.bf16.msra.mxu0 %v712_v36 }
  0xe4   : > { %v368_v22 = vpop.f32.mrb[0].mxu0 }
  0xe5   : > { %v369_v23 = vadd.f32 %v620_v21, %v368_v22  ;;  %v659_v24 = vpop.f32.mrb[1].mxu0 }
  0xe7   : > { %v373_v25 = vmul.f32 1.442695, %v369_v23  ;;  %vm372_vm2 = vcmp.gt.f32.partialorder %v369_v23, 0.0 }
  0xe9   : > { %725 = vpow2.f32 %v373_v25 }
  0xf3   : > { %v726_v26 = vpop.eup %725 }
  0xf4   : > { %v622_v27 = vadd.f32 -1.0, %v726_v26 }
  0xf6   : > { %v376_v28 = vmul.f32 1.6732632, %v622_v27 }
  0xf8   : > { %v377_v29 = vsel %vm372_vm2, %v369_v23, %v376_v28 }
  0xf9   : > { %v378_v30 = vmul.f32 1.050701, %v377_v29 }
  0xfb   : > { %677 = vmatmul.mubr.msk.f32.vlgmr.msra.gmra.mrb[0].mxu1 %vm386_vm3, %v378_v30 }
 0x1ce   : > { %v456_v38 = vpop.f32.mrb[0].mxu1 }
 0x1cf   : > { %v457_v39 = vadd.f32 %v623_v37, %v456_v38  ;;  %v678_v40 = vpop.f32.mrb[1].mxu1 }
 0x1d1   : > { %v461_v41 = vmul.f32 1.442695, %v457_v39  ;;  %vm460_vm4 = vcmp.gt.f32.partialorder %v457_v39, 0.0 }
 0x1d3   : > { %727 = vpow2.f32 %v461_v41 }
 0x1dd   : > { %v728_v42 = vpop.eup %727 }
 0x1de   : > { %v625_v43 = vadd.f32 -1.0, %v728_v42 }
 0x1e0   : > { %v464_v44 = vmul.f32 1.6732632, %v625_v43 }
 0x1e2   : > { %v465_v45 = vsel %vm460_vm4, %v457_v39, %v464_v44 }
 0x1e3   : > { %v466_v46 = vmul.f32 1.050701, %v465_v45 }
 0x1e5   : > { %688 = vmatmul.mubr.msk.f32.vlgmr.msra.gmra.mrb[2].mxu0 %vm298_vm1, %v466_v46 }
 0x2b8   : > { %v543_v48 = vpop.f32.mrb[2].mxu0 }
 0x2b9   : > { %v544_v49 = vadd.f32 %v626_v47, %v543_v48  ;;  %v689_v50 = vpop.f32.mrb[3].mxu0 }
 0x2bb   : > { %v548_v51 = vsel %vm547_vm5, %v544_v49, -inf }
 0x2bc   : > { %549 = vmax.xlane.f32.xlu0 %v548_v51 }
 0x349   : > { %v550_v52 = vpop.xlane.xlu0 %549 }
 0x34a   : > { %v551_v53 = vsub.f32 %v544_v49, %v550_v52 }
 0x34c   : > { %v552_v54 = vmul.f32 1.442695, %v551_v53 }
 0x34e   : > { %729 = vpow2.f32 %v552_v54 }
 0x358   : > { %v730_v55 = vpop.eup %729 }
 0x359   : > { %v554_v56 = vsel %vm547_vm5, %v730_v55, 0.0 }
 0x35a   : > { %555 = vadd.xlane.f32.xlu0 %v554_v56 }
 0x3e7   : > { %v556_v57 = vpop.xlane.xlu0 %555 }
 0x3e8   : > { %731 = vrcp.f32 %v556_v57 }
 0x3f2   : > { %v732_v58 = vpop.eup %731 }
 0x3f3   : > { %v558_v59 = vmul.f32 %v732_v58, %v730_v55 }
 0x3f5   : > { %559 = vst.msk [vmem:[%s273_s29] sm:$0xff] %vm547_vm5, %v558_v59 }
 0x3f6 PF: > { %s17_s24 = sadd.s32 1, %s739_s24  }
 0x3f7   : > { %p14_p4 = scmp.ge.s32.totalorder %s17_s24, 4  }
 0x3f9   :  { %16 = sbr.rel (!%p14_p4) target bundleno = 1 (0x1), region = 78 }

</bundles_post_ra>
